<compile_context>
chip_gen: v7x
topology: tpu7x:2x2x1
jax: 0.10.0
libtpu: 0.0.40
codegen_flags: <defaults>
</compile_context>

<pallas_src>
import numpy as np

import jax
import jax.numpy as jnp
from jax import lax
from jax.experimental import pallas as pl
from jax.experimental.pallas import tpu as pltpu


def _round_up(x, mult):
    return ((x + mult - 1) // mult) * mult


def _divisor_tile(dim, max_tile, align):
    """Largest t <= max_tile with t % align == 0 and dim % t == 0 (else None)."""
    t = (min(max_tile, dim) // align) * align
    while t >= align:
        if dim % t == 0:
            return t
        t -= align
    return None


def _make_kernel(has_bias, multi_k):
    """y[TB, TN] = x[TB, TK] @ w[TN, TK].T (+ b[1, TN]); K-accumulated if multi_k."""

    def kernel(*refs):
        if has_bias:
            if multi_k:
                x_ref, w_ref, b_ref, o_ref, acc_ref = refs
            else:
                x_ref, w_ref, b_ref, o_ref = refs
        else:
            if multi_k:
                x_ref, w_ref, o_ref, acc_ref = refs
            else:
                x_ref, w_ref, o_ref = refs

        # Contract dim 1 of x with dim 1 of the PyTorch-layout (out, in) weight:
        # the MXU consumes the transposed RHS directly, no HBM transpose pass.
        part = lax.dot_general(
            x_ref[...], w_ref[...],
            dimension_numbers=(((1,), (1,)), ((), ())),
            preferred_element_type=jnp.float32)

        if multi_k:
            k = pl.program_id(2)

            @pl.when(k == 0)
            def _():
                acc_ref[...] = jnp.zeros_like(acc_ref)

            acc_ref[...] += part

            @pl.when(k == pl.num_programs(2) - 1)
            def _():
                acc = acc_ref[...]
                if has_bias:
                    acc = acc + b_ref[...]
                o_ref[...] = acc.astype(o_ref.dtype)
        else:
            if has_bias:
                part = part + b_ref[...]
            o_ref[...] = part.astype(o_ref.dtype)

    return kernel


def _pallas_matmul(x, w, b, out_dtype, *, block_rows=256,
                   single_buffer_weights=True):
    """y = x @ w.T (+ b).  x: (R, K), w: (N, K) [PyTorch layout], b: (N,)|None."""
    R, K = x.shape
    N = w.shape[0]
    in_itemsize = int(np.dtype(x.dtype).itemsize)
    out_itemsize = int(np.dtype(out_dtype).itemsize)

    # ---- tile selection ----------------------------------------------------
    K_CAP, N_CAP = 4096, 2048
    if K <= K_CAP:
        TK = K
    else:
        TK = _divisor_tile(K, K_CAP, 128) or K_CAP          # pad K if no divisor
    if N <= N_CAP:
        TN = N
    else:
        # 256-aligned tiles match the v6e/v7x MXU; 128 for v5e / odd shapes.
        TN = _divisor_tile(N, N_CAP, 256) or _divisor_tile(N, N_CAP, 128) or N
    if R <= block_rows:
        TB = R                                              # single row slab
    else:
        TB = _divisor_tile(R, block_rows, 8) or block_rows  # pad rows if needed

    Kp, Np, Rp = _round_up(K, TK), _round_up(N, TN), _round_up(R, TB)
    if Kp != K:                       # rare fallback: zero-pad contraction dim
        x = jnp.pad(x, ((0, 0), (0, Kp - K)))
        w = jnp.pad(w, ((0, 0), (0, Kp - K)))
    if Np != N:
        w = jnp.pad(w, ((0, Np - N), (0, 0)))
        if b is not None:
            b = jnp.pad(b, (0, Np - N))
    if Rp != R:                       # rare fallback: zero-pad row dim
        x = jnp.pad(x, ((0, Rp - R), (0, 0)))

    grid = (Rp // TB, Np // TN, Kp // TK)
    multi_k = grid[2] > 1
    has_bias = b is not None
    # Single-buffer weight/bias only when they are truly grid-resident
    # (constant block index) -- otherwise double-buffering hides their DMA.
    weight_resident = (grid[1] == 1 and grid[2] == 1)
    want_single = single_buffer_weights and weight_resident

    x_spec = pl.BlockSpec((TB, TK), lambda i, j, k: (i, k))
    o_spec = pl.BlockSpec((TB, TN), lambda i, j, k: (i, j))
    scratch = [pltpu.VMEM((TB, TN), jnp.float32)] if multi_k else []

    wbuf = 1 if want_single else 2
    vmem_bytes = (2 * TB * TK * in_itemsize                    # x (double buffered)
                  + wbuf * TN * TK * in_itemsize               # weight
                  + (wbuf * TN * 4 if has_bias else 0)         # bias
                  + 2 * TB * TN * out_itemsize                 # output
                  + (TB * TN * 4 if multi_k else 0))           # accumulator
    vmem_limit = int(min(max(int(vmem_bytes * 1.5) + (4 << 20), 16 << 20),
                         100 << 20))

    cost = pl.CostEstimate(
        flops=int(2 * Rp * Kp * Np + (Rp * Np if has_bias else 0)),
        transcendentals=0,
        bytes_accessed=int((Rp * Kp + Np * Kp) * in_itemsize
                           + (Np * 4 if has_bias else 0)
                           + Rp * Np * out_itemsize))

    def _call(single_buffer):
        kw = dict(pipeline_mode=pl.Buffered(1)) if single_buffer else {}
        w_spec = pl.BlockSpec((TN, TK), lambda i, j, k: (j, k), **kw)
        in_specs = [x_spec, w_spec]
        operands = [x, w]
        if has_bias:
            in_specs.append(pl.BlockSpec((1, TN), lambda i, j, k: (0, j), **kw))
            operands.append(b.reshape(1, Np))
        return pl.pallas_call(
            _make_kernel(has_bias, multi_k),
            out_shape=jax.ShapeDtypeStruct((Rp, Np), out_dtype),
            grid=grid,
            in_specs=in_specs,
            out_specs=o_spec,
            scratch_shapes=scratch,
            compiler_params=pltpu.CompilerParams(
                dimension_semantics=("parallel", "parallel", "arbitrary"),
                vmem_limit_bytes=vmem_limit),
            cost_estimate=cost,
        )(*operands)

    try:
        out = _call(want_single)
    except Exception:
        # Fallback if this JAX build rejects pipeline_mode=pl.Buffered(1).
        if not want_single:
            raise
        out = _call(False)

    if Rp != R or Np != N:
        out = out[:R, :N]
    return out


def multilinear_forward(x, weight, bias, n, m, *, block_rows=256,
                        compute_dtype=None, out_dtype=jnp.float32,
                        lane_dense=True):
    """MultiLinear forward: (B, in_features) -> (B, n, m).

    weight is used in its PyTorch (out_features, in_features) layout as-is
    (no transpose).  compute_dtype=jnp.bfloat16 halves x/weight HBM traffic
    (MXU accumulation stays f32; expect ~1e-2 relative error vs f32).
    """
    B, K = x.shape
    N = weight.shape[0]
    assert N == n * m, (N, n, m)
    assert weight.shape[1] == K, (weight.shape, K)

    w = jnp.asarray(weight)
    b = None if bias is None else jnp.asarray(bias, jnp.float32)
    if compute_dtype is not None:
        x = x.astype(compute_dtype)
        w = w.astype(compute_dtype)
    else:
        x = jnp.asarray(x, jnp.float32)
        w = w.astype(jnp.float32)

    # Lane-dense packing for narrow heads (shipped case N = 32): output tiles
    # become full-lane (B/r, 128) slabs instead of masked 32-wide stores.
    r = 0
    if lane_dense and 0 < N < 128 and 128 % N == 0:
        r = 128 // N
        if B % r != 0 or r * K > 256:
            r = 0
    if r > 1:
        xr = x.reshape(B // r, r * K)                  # free metadata reshape
        wr = jnp.kron(jnp.eye(r, dtype=w.dtype), w)    # (128, r*K) block-diag
        br = None if b is None else jnp.tile(b, r)     # (128,)
        out = _pallas_matmul(xr, wr, br, out_dtype, block_rows=block_rows)
        return out.reshape(B, n, m)                    # contiguous -> free

    out = _pallas_matmul(x, w, b, out_dtype, block_rows=block_rows)
    return out.reshape(B, n, m)


def init_params(key, in_features, n, m):
    """Mimics kaiming_uniform_(a=sqrt(5)) + fan_in-bounded bias init."""
    N = n * m
    kw, kb = jax.random.split(key)
    bound = 1.0 / (in_features ** 0.5)
    weight = jax.random.uniform(kw, (N, in_features), minval=-bound,
                                maxval=bound, dtype=jnp.float32)
    bias = jax.random.uniform(kb, (N,), minval=-bound, maxval=bound,
                              dtype=jnp.float32)
    return weight, bias


def reference_forward(x, weight, bias, n, m):
    out = x @ weight.T
    if bias is not None:
        out = out + bias
    return out.reshape(-1, n, m)


if __name__ == "__main__":
    in_features = 16
    n, m = 8, 4               # out_features = n * m = 32
    B = 16                    # flattened (-1, K) rows, e.g. batch=2 * seq=8

    key = jax.random.PRNGKey(0)
    k_x, k_p, k_x2 = jax.random.split(key, 3)
    x = jax.random.normal(k_x, (B, in_features), dtype=jnp.float32)
    weight, bias = init_params(k_p, in_features, n, m)

    # Lane-dense (block-diagonal) path.
    out = jax.block_until_ready(multilinear_forward(x, weight, bias, n, m))
    ref = reference_forward(x, weight, bias, n, m)
    assert out.shape == (B, n, m), out.shape
    assert jnp.allclose(out, ref, atol=1e-5, rtol=1e-5), (
        float(jnp.max(jnp.abs(out - ref))))

    # Ragged batch -> generic fallback path (no padding, full-block rows).
    B2 = 13
    x2 = jax.random.normal(k_x2, (B2, in_features), dtype=jnp.float32)
    out2 = jax.block_until_ready(multilinear_forward(x2, weight, bias, n, m))
    ref2 = reference_forward(x2, weight, bias, n, m)
    assert out2.shape == (B2, n, m), out2.shape
    assert jnp.allclose(out2, ref2, atol=1e-5, rtol=1e-5), (
        float(jnp.max(jnp.abs(out2 - ref2))))

    # bias=None variant (bias ref/add skipped entirely inside the kernel).
    out3 = jax.block_until_ready(multilinear_forward(x, weight, None, n, m))
    ref3 = reference_forward(x, weight, None, n, m)
    assert jnp.allclose(out3, ref3, atol=1e-5, rtol=1e-5), (
        float(jnp.max(jnp.abs(out3 - ref3))))

    print("KERNEL_OK")
</pallas_src>

<mosaic_0001>
module attributes {stable_mosaic.version = 11 : i64} {
  func.func @kernel(%arg0: i32, %arg1: i32, %arg2: i32, %arg3: memref<4x64xf32, #tpu.memory_space<vmem>>, %arg4: memref<128x64xf32, #tpu.memory_space<vmem>>, %arg5: memref<1x128xf32, #tpu.memory_space<vmem>>, %arg6: memref<4x128xf32, #tpu.memory_space<vmem>>) attributes {dimension_semantics = [#tpu.dimension_semantics<parallel>, #tpu.dimension_semantics<parallel>, #tpu.dimension_semantics<arbitrary>], iteration_bounds = array<i64: 1, 1, 1>, scalar_prefetch = 0 : i64, scratch_operands = 0 : i64, tpu.core_type = #tpu.core_type<tc>, window_params = [{transform_indices = @transform_0, window_bounds = array<i64: 4, 64>}, {pipeline_mode = #tpu.pipeline_mode<synchronous>, transform_indices = @transform_1, window_bounds = array<i64: 128, 64>}, {pipeline_mode = #tpu.pipeline_mode<synchronous>, transform_indices = @transform_2, window_bounds = array<i64: 1, 128>}, {transform_indices = @transform_3, window_bounds = array<i64: 4, 128>}]} {
    %c0 = arith.constant 0 : index
    %c0_0 = arith.constant 0 : index
    %0 = vector.load %arg3[%c0, %c0_0] : memref<4x64xf32, #tpu.memory_space<vmem>>, vector<4x64xf32>
    %c0_1 = arith.constant 0 : index
    %c0_2 = arith.constant 0 : index
    %1 = vector.load %arg4[%c0_1, %c0_2] : memref<128x64xf32, #tpu.memory_space<vmem>>, vector<128x64xf32>
    %cst = arith.constant dense<0.000000e+00> : vector<4x128xf32>
    %2 = tpu.matmul %0, %1, %cst {dimension_numbers = #tpu.dot_dimension_numbers<[1], [1], [0], [0], [0, 0, 1, 0], [], []>} : vector<4x64xf32>, vector<128x64xf32>, vector<4x128xf32> -> vector<4x128xf32>
    %c0_3 = arith.constant 0 : index
    %c0_4 = arith.constant 0 : index
    %3 = vector.load %arg5[%c0_3, %c0_4] : memref<1x128xf32, #tpu.memory_space<vmem>>, vector<1x128xf32>
    %4 = vector.broadcast %3 : vector<1x128xf32> to vector<4x128xf32>
    %5 = arith.addf %2, %4 : vector<4x128xf32>
    %c0_5 = arith.constant 0 : index
    %c0_6 = arith.constant 0 : index
    %6 = vector.load %arg6[%c0_5, %c0_6] : memref<4x128xf32, #tpu.memory_space<vmem>>, vector<4x128xf32>
    tpu.vector_store %arg6[%c0_5, %c0_6], %5 {strides = array<i32>} : memref<4x128xf32, #tpu.memory_space<vmem>>, vector<4x128xf32>,
    return
  }
  func.func @transform_0(%arg0: i32, %arg1: i32, %arg2: i32) -> (i32, i32) {
    %c0_i32 = arith.constant 0 : i32
    return %arg0, %arg2 : i32, i32
  }
  func.func @transform_1(%arg0: i32, %arg1: i32, %arg2: i32) -> (i32, i32) {
    %c0_i32 = arith.constant 0 : i32
    return %arg1, %arg2 : i32, i32
  }
  func.func @transform_2(%arg0: i32, %arg1: i32, %arg2: i32) -> (i32, i32) {
    %c0_i32 = arith.constant 0 : i32
    %c0_i32_0 = arith.constant 0 : i32
    return %c0_i32, %arg1 : i32, i32
  }
  func.func @transform_3(%arg0: i32, %arg1: i32, %arg2: i32) -> (i32, i32) {
    %c0_i32 = arith.constant 0 : i32
    return %arg0, %arg1 : i32, i32
  }
}

module attributes {stable_mosaic.version = 11 : i64} {
  func.func @kernel(%arg0: i32, %arg1: i32, %arg2: i32, %arg3: memref<4x64xf32, #tpu.memory_space<vmem>>, %arg4: memref<128x64xf32, #tpu.memory_space<vmem>>, %arg5: memref<1x128xf32, #tpu.memory_space<vmem>>, %arg6: memref<4x128xf32, #tpu.memory_space<vmem>>) attributes {dimension_semantics = [#tpu.dimension_semantics<parallel>, #tpu.dimension_semantics<parallel>, #tpu.dimension_semantics<arbitrary>], iteration_bounds = array<i64: 1, 1, 1>, scalar_prefetch = 0 : i64, scratch_operands = 0 : i64, tpu.core_type = #tpu.core_type<tc>, window_params = [{transform_indices = @transform_0, window_bounds = array<i64: 4, 64>}, {transform_indices = @transform_1, window_bounds = array<i64: 128, 64>}, {transform_indices = @transform_2, window_bounds = array<i64: 1, 128>}, {transform_indices = @transform_3, window_bounds = array<i64: 4, 128>}]} {
    %c0 = arith.constant 0 : index
    %c0_0 = arith.constant 0 : index
    %0 = vector.load %arg3[%c0, %c0_0] : memref<4x64xf32, #tpu.memory_space<vmem>>, vector<4x64xf32>
    %c0_1 = arith.constant 0 : index
    %c0_2 = arith.constant 0 : index
    %1 = vector.load %arg4[%c0_1, %c0_2] : memref<128x64xf32, #tpu.memory_space<vmem>>, vector<128x64xf32>
    %cst = arith.constant dense<0.000000e+00> : vector<4x128xf32>
    %2 = tpu.matmul %0, %1, %cst {dimension_numbers = #tpu.dot_dimension_numbers<[1], [1], [0], [0], [0, 0, 1, 0], [], []>} : vector<4x64xf32>, vector<128x64xf32>, vector<4x128xf32> -> vector<4x128xf32>
    %c0_3 = arith.constant 0 : index
    %c0_4 = arith.constant 0 : index
    %3 = vector.load %arg5[%c0_3, %c0_4] : memref<1x128xf32, #tpu.memory_space<vmem>>, vector<1x128xf32>
    %4 = vector.broadcast %3 : vector<1x128xf32> to vector<4x128xf32>
    %5 = arith.addf %2, %4 : vector<4x128xf32>
    %c0_5 = arith.constant 0 : index
    %c0_6 = arith.constant 0 : index
    %6 = vector.load %arg6[%c0_5, %c0_6] : memref<4x128xf32, #tpu.memory_space<vmem>>, vector<4x128xf32>
    tpu.vector_store %arg6[%c0_5, %c0_6], %5 {strides = array<i32>} : memref<4x128xf32, #tpu.memory_space<vmem>>, vector<4x128xf32>,
    return
  }
  func.func @transform_0(%arg0: i32, %arg1: i32, %arg2: i32) -> (i32, i32) {
    %c0_i32 = arith.constant 0 : i32
    return %arg0, %arg2 : i32, i32
  }
  func.func @transform_1(%arg0: i32, %arg1: i32, %arg2: i32) -> (i32, i32) {
    %c0_i32 = arith.constant 0 : i32
    return %arg1, %arg2 : i32, i32
  }
  func.func @transform_2(%arg0: i32, %arg1: i32, %arg2: i32) -> (i32, i32) {
    %c0_i32 = arith.constant 0 : i32
    %c0_i32_0 = arith.constant 0 : i32
    return %c0_i32, %arg1 : i32, i32
  }
  func.func @transform_3(%arg0: i32, %arg1: i32, %arg2: i32) -> (i32, i32) {
    %c0_i32 = arith.constant 0 : i32
    return %arg0, %arg1 : i32, i32
  }
}

</mosaic_0001>

<bundles_post_ra>
// kernel: tpu_custom_call.1
= control target key start
LH: loop header
LB: loop body
LE: loop exit
PB: predicated region body
PF: predicated region fallthrough
CT: control target
= control target key end

     0   :  { %vm39_vm0 = vcmask 523264   ;;  %v306_v2 = vmov 0.0|0.0   ;;  %vm307_vm2 = vmmov 0   ;;  %v308_v5 = vmov 0.0   ;;  %s419_s0 = inlined_call_operand.vmem [shape: f32[4,64], index: 0, kind: input, shape index: {}]   ;;  %s420_s1 = inlined_call_operand.vmem [shape: f32[128,64], index: 1, kind: input, shape index: {}]   ;;  %s421_s2 = inlined_call_operand.vmem [shape: f32[1,128], index: 2, kind: input, shape index: {}]   ;;  %s422_s3 = inlined_call_operand.hbm [shape: f32[4,128], index: 3, kind: output, shape index: {}]  }
   0x1   :  { %v16_v0 = vld [vmem:[%s420_s1] sm:$0xff]  ;;  %v17_v1 = vld [vmem:[%s420_s1 + $0x8] sm:$0xff]  ;;  %246 = vmatprep.subr.bf16.mxu0 %v306_v2  ;;  %vm338_vm1 = vmpackc.low %vm39_vm0, %vm39_vm0  ;;  %243 = vmatprep.mubr.msk.f32.mxu0 %vm307_vm2, %v308_v5 }
   0x2   :  { %v247_v3 = vpack.c.bf16 %v17_v1, %v16_v0  ;;  %v18_v6 = vld [vmem:[%s420_s1 + $0x10] sm:$0xff]  ;;  %v19_v7 = vld [vmem:[%s420_s1 + $0x18] sm:$0xff] }
   0x4   :  { %249 = vmatpush3.bf16.xpose.msk.msra.mxu0 %vm338_vm1, %v247_v3 }
   0x5   :  { %250 = vmatprep.subr.bf16.mxu0 %v306_v2 }
   0x6   :  { %8 = vsyncpa [#allocation3], 0  ;;  %v251_v8 = vpack.c.bf16 %v19_v7, %v18_v6  ;;  %v20_v9 = vld [vmem:[%s420_s1 + $0x20] sm:$0xff]  ;;  %v21_v10 = vld [vmem:[%s420_s1 + $0x28] sm:$0xff]  ;;  %s309_s21 = smov [#allocation2]  }
   0x7   :  { %v255_v11 = vpack.c.bf16 %v21_v10, %v20_v9  ;;  %v22_v12 = vld [vmem:[%s420_s1 + $0x30] sm:$0xff]  ;;  %v23_v13 = vld [vmem:[%s420_s1 + $0x38] sm:$0xff]  ;;  %v24_v15 = vld [vmem:[%s420_s1 + $0x40] sm:$0xff]  ;;  %s168_s22 = sshll.u32 %s309_s21, 4  ;;  %s169_s22 = int_to_ptr.vmem [resolvable:$true] %s168_s22 }
   0x8   :  { %v259_v14 = vpack.c.bf16 %v23_v13, %v22_v12  ;;  %v25_v16 = vld [vmem:[%s420_s1 + $0x48] sm:$0xff]  ;;  %v26_v18 = vld [vmem:[%s420_s1 + $0x50] sm:$0xff]  ;;  %v27_v19 = vld [vmem:[%s420_s1 + $0x58] sm:$0xff]  ;;  %p287_p1 = scmp.lt.s32.totalorder %s169_s22, %s169_s22 }
   0x9   :  { %v263_v17 = vpack.c.bf16 %v25_v16, %v24_v15  ;;  %v267_v20 = vpack.c.bf16 %v27_v19, %v26_v18  ;;  %v28_v21 = vld [vmem:[%s420_s1 + $0x60] sm:$0xff]  ;;  %v29_v22 = vld [vmem:[%s420_s1 + $0x68] sm:$0xff]  ;;  %v30_v24 = vld [vmem:[%s420_s1 + $0x70] sm:$0xff] }
   0xa   :  { %v271_v23 = vpack.c.bf16 %v29_v22, %v28_v21  ;;  %v31_v25 = vld [vmem:[%s420_s1 + $0x78] sm:$0xff]  ;;  %v15_v27 = vld [vmem:[%s419_s0] sm:$0xf]  ;;  %s282_s1 = scalar_lea.vmem %s169_s22, 64 }
   0xb   :  { %v275_v26 = vpack.c.bf16 %v31_v25, %v30_v24  ;;  %v176_v28 = vld [vmem:[%s421_s2] ss:$0 sm:$0xff]  ;;  %p283_p0 = scmp.ne.s32.totalorder %s169_s22, %s282_s1  ;;  %p288_p2 = scmp.lt.s32.totalorder %s282_s1, %s282_s1 }
   0xc   :  { %253 = vmatpush3.bf16.xpose.msk.msra.mxu0 %vm338_vm1, %v251_v8 }
   0xd   :  { %254 = vmatprep.subr.bf16.mxu0 %v306_v2  ;;  %p289_p3 = por %p288_p2, %p287_p1 }
   0xf   :  { %p290_p4 = pnand %p289_p3, %p283_p0 }
  0x14   :  { %257 = vmatpush3.bf16.xpose.msk.msra.mxu0 %vm338_vm1, %v255_v11 }
  0x15   :  { %258 = vmatprep.subr.bf16.mxu0 %v306_v2 }
  0x1c   :  { %261 = vmatpush3.bf16.xpose.msk.msra.mxu0 %vm338_vm1, %v259_v14 }
  0x1d   :  { %262 = vmatprep.subr.bf16.mxu0 %v306_v2 }
  0x24   :  { %265 = vmatpush3.bf16.xpose.msk.msra.mxu0 %vm338_vm1, %v263_v17 }
  0x25   :  { %266 = vmatprep.subr.bf16.mxu0 %v306_v2 }
  0x2c   :  { %269 = vmatpush3.bf16.xpose.msk.msra.mxu0 %vm338_vm1, %v267_v20 }
  0x2d   :  { %270 = vmatprep.subr.bf16.mxu0 %v306_v2 }
  0x34   :  { %273 = vmatpush3.bf16.xpose.msk.msra.mxu0 %vm338_vm1, %v271_v23 }
  0x35   :  { %274 = vmatprep.subr.bf16.mxu0 %v306_v2 }
  0x3c   :  { %277 = vmatpush3.bf16.xpose.msk.msra.mxu0 %vm338_vm1, %v275_v26 }
  0x43   :  { %244 = vmatmul.mubr.msk.f32.vlgmr.msra.gmra.mrb[0].mxu0 %vm39_vm0, %v15_v27 }
 0x116   :  { %v157_v29 = vpop.f32.mrb[0].mxu0 }
 0x117   :  { %v158_v30 = vadd.f32 %v176_v28, %v157_v29  ;;  %v245_v31 = vpop.f32.mrb[1].mxu0 }
 0x119   :  { %161 = vst [vmem:[#allocation2] sm:$0xf] %v158_v30 }
 0x11a   :  { %293 = shalt.err (!%p290_p4)
}
 0x11b   :  { %s294_s24 = scalar_lea.hbm %s422_s3, 64 }
 0x11c   :  { %p295_p5 = scmp.ne.s32.totalorder %s422_s3, %s294_s24  ;;  %p298_p6 = scmp.lt.u32.totalorder %s294_s24, %s422_s3 }
 0x11e   :  { %p300_p7 = pnand %p298_p6, %p295_p5 }
 0x120   :  { %303 = shalt.err (!%p300_p7)
}
 0x121   :  { %171 = dma.vmem_to_hbm [thread:$0]  %s169_s22, 64, %s422_s3, [#allocation3]  }
 0x122   :  { %304 = dma.done.wait [#allocation3], 64  }
 0x123   :  { %305 = vsyncadd [#allocation3], 4294967232 }
 0x124   :  { %175 = vsyncpa [#allocation3], 1 }

// kernel: tpu_custom_call.1
= control target key start
LH: loop header
LB: loop body
LE: loop exit
PB: predicated region body
PF: predicated region fallthrough
CT: control target
= control target key end

     0   :  { %vm39_vm0 = vcmask 523264   ;;  %v306_v2 = vmov 0.0|0.0   ;;  %vm307_vm2 = vmmov 0   ;;  %v308_v5 = vmov 0.0   ;;  %s419_s0 = inlined_call_operand.vmem [shape: f32[4,64], index: 0, kind: input, shape index: {}]   ;;  %s420_s1 = inlined_call_operand.vmem [shape: f32[128,64], index: 1, kind: input, shape index: {}]   ;;  %s421_s2 = inlined_call_operand.vmem [shape: f32[1,128], index: 2, kind: input, shape index: {}]   ;;  %s422_s3 = inlined_call_operand.hbm [shape: f32[4,128], index: 3, kind: output, shape index: {}]  }
   0x1   :  { %v16_v0 = vld [vmem:[%s420_s1] sm:$0xff]  ;;  %v17_v1 = vld [vmem:[%s420_s1 + $0x8] sm:$0xff]  ;;  %246 = vmatprep.subr.bf16.mxu0 %v306_v2  ;;  %vm338_vm1 = vmpackc.low %vm39_vm0, %vm39_vm0  ;;  %243 = vmatprep.mubr.msk.f32.mxu0 %vm307_vm2, %v308_v5 }
   0x2   :  { %v247_v3 = vpack.c.bf16 %v17_v1, %v16_v0  ;;  %v18_v6 = vld [vmem:[%s420_s1 + $0x10] sm:$0xff]  ;;  %v19_v7 = vld [vmem:[%s420_s1 + $0x18] sm:$0xff] }
   0x4   :  { %249 = vmatpush3.bf16.xpose.msk.msra.mxu0 %vm338_vm1, %v247_v3 }
   0x5   :  { %250 = vmatprep.subr.bf16.mxu0 %v306_v2 }
   0x6   :  { %8 = vsyncpa [#allocation3], 0  ;;  %v251_v8 = vpack.c.bf16 %v19_v7, %v18_v6  ;;  %v20_v9 = vld [vmem:[%s420_s1 + $0x20] sm:$0xff]  ;;  %v21_v10 = vld [vmem:[%s420_s1 + $0x28] sm:$0xff]  ;;  %s309_s21 = smov [#allocation2]  }
   0x7   :  { %v255_v11 = vpack.c.bf16 %v21_v10, %v20_v9  ;;  %v22_v12 = vld [vmem:[%s420_s1 + $0x30] sm:$0xff]  ;;  %v23_v13 = vld [vmem:[%s420_s1 + $0x38] sm:$0xff]  ;;  %v24_v15 = vld [vmem:[%s420_s1 + $0x40] sm:$0xff]  ;;  %s168_s22 = sshll.u32 %s309_s21, 4  ;;  %s169_s22 = int_to_ptr.vmem [resolvable:$true] %s168_s22 }
   0x8   :  { %v259_v14 = vpack.c.bf16 %v23_v13, %v22_v12  ;;  %v25_v16 = vld [vmem:[%s420_s1 + $0x48] sm:$0xff]  ;;  %v26_v18 = vld [vmem:[%s420_s1 + $0x50] sm:$0xff]  ;;  %v27_v19 = vld [vmem:[%s420_s1 + $0x58] sm:$0xff]  ;;  %p287_p1 = scmp.lt.s32.totalorder %s169_s22, %s169_s22 }
   0x9   :  { %v263_v17 = vpack.c.bf16 %v25_v16, %v24_v15  ;;  %v267_v20 = vpack.c.bf16 %v27_v19, %v26_v18  ;;  %v28_v21 = vld [vmem:[%s420_s1 + $0x60] sm:$0xff]  ;;  %v29_v22 = vld [vmem:[%s420_s1 + $0x68] sm:$0xff]  ;;  %v30_v24 = vld [vmem:[%s420_s1 + $0x70] sm:$0xff] }
   0xa   :  { %v271_v23 = vpack.c.bf16 %v29_v22, %v28_v21  ;;  %v31_v25 = vld [vmem:[%s420_s1 + $0x78] sm:$0xff]  ;;  %v15_v27 = vld [vmem:[%s419_s0] sm:$0xf]  ;;  %s282_s1 = scalar_lea.vmem %s169_s22, 64 }
   0xb   :  { %v275_v26 = vpack.c.bf16 %v31_v25, %v30_v24  ;;  %v176_v28 = vld [vmem:[%s421_s2] ss:$0 sm:$0xff]  ;;  %p283_p0 = scmp.ne.s32.totalorder %s169_s22, %s282_s1  ;;  %p288_p2 = scmp.lt.s32.totalorder %s282_s1, %s282_s1 }
   0xc   :  { %253 = vmatpush3.bf16.xpose.msk.msra.mxu0 %vm338_vm1, %v251_v8 }
   0xd   :  { %254 = vmatprep.subr.bf16.mxu0 %v306_v2  ;;  %p289_p3 = por %p288_p2, %p287_p1 }
   0xf   :  { %p290_p4 = pnand %p289_p3, %p283_p0 }
  0x14   :  { %257 = vmatpush3.bf16.xpose.msk.msra.mxu0 %vm338_vm1, %v255_v11 }
  0x15   :  { %258 = vmatprep.subr.bf16.mxu0 %v306_v2 }
  0x1c   :  { %261 = vmatpush3.bf16.xpose.msk.msra.mxu0 %vm338_vm1, %v259_v14 }
  0x1d   :  { %262 = vmatprep.subr.bf16.mxu0 %v306_v2 }
  0x24   :  { %265 = vmatpush3.bf16.xpose.msk.msra.mxu0 %vm338_vm1, %v263_v17 }
  0x25   :  { %266 = vmatprep.subr.bf16.mxu0 %v306_v2 }
  0x2c   :  { %269 = vmatpush3.bf16.xpose.msk.msra.mxu0 %vm338_vm1, %v267_v20 }
  0x2d   :  { %270 = vmatprep.subr.bf16.mxu0 %v306_v2 }
  0x34   :  { %273 = vmatpush3.bf16.xpose.msk.msra.mxu0 %vm338_vm1, %v271_v23 }
  0x35   :  { %274 = vmatprep.subr.bf16.mxu0 %v306_v2 }
  0x3c   :  { %277 = vmatpush3.bf16.xpose.msk.msra.mxu0 %vm338_vm1, %v275_v26 }
  0x43   :  { %244 = vmatmul.mubr.msk.f32.vlgmr.msra.gmra.mrb[0].mxu0 %vm39_vm0, %v15_v27 }
 0x116   :  { %v157_v29 = vpop.f32.mrb[0].mxu0 }
 0x117   :  { %v158_v30 = vadd.f32 %v176_v28, %v157_v29  ;;  %v245_v31 = vpop.f32.mrb[1].mxu0 }
 0x119   :  { %161 = vst [vmem:[#allocation2] sm:$0xf] %v158_v30 }
 0x11a   :  { %293 = shalt.err (!%p290_p4)
}
 0x11b   :  { %s294_s24 = scalar_lea.hbm %s422_s3, 64 }
 0x11c   :  { %p295_p5 = scmp.ne.s32.totalorder %s422_s3, %s294_s24  ;;  %p298_p6 = scmp.lt.u32.totalorder %s294_s24, %s422_s3 }
 0x11e   :  { %p300_p7 = pnand %p298_p6, %p295_p5 }
 0x120   :  { %303 = shalt.err (!%p300_p7)
}
 0x121   :  { %171 = dma.vmem_to_hbm [thread:$0]  %s169_s22, 64, %s422_s3, [#allocation3]  }
 0x122   :  { %304 = dma.done.wait [#allocation3], 64  }
 0x123   :  { %305 = vsyncadd [#allocation3], 4294967232 }
 0x124   :  { %175 = vsyncpa [#allocation3], 1 }

</bundles_post_ra>
